<compile_context>
chip_gen: v5e
topology: v5e:2x2
jax: 0.10.0
libtpu: 0.0.40
codegen_flags: <defaults>
</compile_context>

<pallas_src>
import jax
import jax.numpy as jnp
import numpy as np
from jax import lax
from jax.experimental import pallas as pl
from jax.experimental.pallas import tpu as pltpu


# ----------------------------------------------------------------------------
# tiling helpers
# ----------------------------------------------------------------------------
def _round_up(x, m):
    return ((x + m - 1) // m) * m


def _tiling(n, pref, align):
    """Return (padded_n, tile). tile divides padded_n; tile is either the whole
    (aligned) extent (legal: block == full dim) or a `pref`-sized tile that is
    a multiple of `align` (8 for sublanes, 128 for lanes)."""
    if n <= pref:
        t = _round_up(max(n, 1), align)
        return t, t
    return _round_up(n, pref), pref


def _pad2d(x, rows, cols):
    pr, pc = rows - x.shape[0], cols - x.shape[1]
    if pr or pc:
        x = jnp.pad(x, ((0, pr), (0, pc)))
    return x


def _pad3d(x, rows, cols):
    pr, pc = rows - x.shape[1], cols - x.shape[2]
    if pr or pc:
        x = jnp.pad(x, ((0, 0), (0, pr), (0, pc)))
    return x


# Tile preferences (review: 512 x 1024 blocks; labels dominate VMEM:
# 2 * 512*1024*4 B per block, double-buffered ~8.4 MiB, well under 48 MiB).
_B_TILE = 512          # batch (sublane) tile
_T_TILE = 1024         # tag-count (lane) tile, multiple of 128 / 256
_VMEM_LIMIT = 48 << 20  # explicit scoped-VMEM cap (safe on v5e/v6e/v7x)


# ----------------------------------------------------------------------------
# Kernel 1: rating -> rating[b] = sum_d u[b,d]*i[b,d]
#   No glue transposes: reduce along lanes from (TB, D) blocks, (Bp, 1) output.
# ----------------------------------------------------------------------------
def _rating_kernel(u_ref, i_ref, o_ref):
    o_ref[...] = jnp.sum(u_ref[...] * i_ref[...], axis=-1, keepdims=True)


def predict_rating_from_emb(u_emb, i_emb):
    B, D = u_emb.shape
    Bp, TB = _tiling(B, _B_TILE, 8)
    u = _pad2d(u_emb.astype(jnp.float32), Bp, D)
    i = _pad2d(i_emb.astype(jnp.float32), Bp, D)
    out = pl.pallas_call(
        _rating_kernel,
        out_shape=jax.ShapeDtypeStruct((Bp, 1), jnp.float32),
        grid=(Bp // TB,),
        in_specs=[pl.BlockSpec((TB, D), lambda ib: (ib, 0)),
                  pl.BlockSpec((TB, D), lambda ib: (ib, 0))],
        out_specs=pl.BlockSpec((TB, 1), lambda ib: (ib, 0)),
        compiler_params=pltpu.CompilerParams(dimension_semantics=("parallel",)),
    )(u, i)
    return out[:B, 0]


# ----------------------------------------------------------------------------
# Kernel 2: fused rating MSE loss -> per-B-tile partial sums ('parallel' grid).
# ----------------------------------------------------------------------------
def _rating_loss_kernel(u_ref, i_ref, lbl_ref, o_ref):
    pred = jnp.sum(u_ref[...] * i_ref[...], axis=-1, keepdims=True)  # (TB, 1)
    d = pred - lbl_ref[...]
    tot = jnp.sum(d * d, axis=0, keepdims=True)                      # (1, 1)
    o_ref[...] = tot.reshape(1, 1, 1)


def rating_mse_loss(u_emb, i_emb, label):
    B, D = u_emb.shape
    Bp, TB = _tiling(B, _B_TILE, 8)
    u = _pad2d(u_emb.astype(jnp.float32), Bp, D)
    i = _pad2d(i_emb.astype(jnp.float32), Bp, D)
    lbl = _pad2d(label.astype(jnp.float32).reshape(B, 1), Bp, 1)
    NB = Bp // TB
    partials = pl.pallas_call(
        _rating_loss_kernel,
        out_shape=jax.ShapeDtypeStruct((NB, 1, 1), jnp.float32),
        grid=(NB,),
        in_specs=[pl.BlockSpec((TB, D), lambda ib: (ib, 0)),
                  pl.BlockSpec((TB, D), lambda ib: (ib, 0)),
                  pl.BlockSpec((TB, 1), lambda ib: (ib, 0))],
        out_specs=pl.BlockSpec((1, 1, 1), lambda ib: (ib, 0, 0)),
        compiler_params=pltpu.CompilerParams(dimension_semantics=("parallel",)),
    )(u, i, lbl)
    # zero padding contributes exactly 0; normalize by the true count.
    return jnp.sum(partials) / float(B)


# ----------------------------------------------------------------------------
# Kernel 3: standalone tag-score matmul  (B,D) x (D,T) -> (B,T) on the MXU.
#   Canonical orientation, bf16 operands from the wrapper, f32 accumulation.
# ----------------------------------------------------------------------------
def _tag_score_kernel(x_ref, tagT_ref, o_ref):
    o_ref[...] = jnp.dot(x_ref[...], tagT_ref[...],
                         preferred_element_type=jnp.float32)


def predict_tag_score(x_emb, tag_emb):
    B, D = x_emb.shape
    T, _ = tag_emb.shape
    Bp, TB = _tiling(B, _B_TILE, 8)
    Tp, TT = _tiling(T, _T_TILE, 128)
    x = _pad2d(x_emb.astype(jnp.bfloat16), Bp, D)
    tT = _pad2d(tag_emb.astype(jnp.bfloat16), Tp, D).T        # (D, Tp)
    out = pl.pallas_call(
        _tag_score_kernel,
        out_shape=jax.ShapeDtypeStruct((Bp, Tp), jnp.float32),
        grid=(Bp // TB, Tp // TT),
        in_specs=[pl.BlockSpec((TB, D), lambda ib, it: (ib, 0)),
                  pl.BlockSpec((D, TT), lambda ib, it: (0, it))],
        out_specs=pl.BlockSpec((TB, TT), lambda ib, it: (ib, it)),
        compiler_params=pltpu.CompilerParams(
            dimension_semantics=("parallel", "parallel"),
            vmem_limit_bytes=_VMEM_LIMIT),
    )(x, tT)
    return out[:B, :T]


# ----------------------------------------------------------------------------
# Kernel 4: head-batched fused tag-pair loss.
#   For each head h: sum over (b,t) of (u@tuT[h] - ul[h])^2 + (i@tiT[h] - il[h])^2
#   Grid (H, NB, NT); output = per-(head, B-tile) partials so head/B stay
#   'parallel' (v7x megacore) and only the T axis accumulates ('arbitrary').
# ----------------------------------------------------------------------------
def _tag_pair_loss_kernel(u_ref, i_ref, tuT_ref, tiT_ref, ul_ref, il_ref, o_ref):
    @pl.when(pl.program_id(2) == 0)
    def _():
        o_ref[...] = jnp.zeros_like(o_ref)

    ut = jnp.dot(u_ref[...], tuT_ref[0], preferred_element_type=jnp.float32)
    it = jnp.dot(i_ref[...], tiT_ref[0], preferred_element_type=jnp.float32)
    du = ut - ul_ref[0]                       # error math stays f32 (v5e-safe)
    di = it - il_ref[0]
    sq = du * du + di * di                    # (TB, TT)
    row = jnp.sum(sq, axis=-1, keepdims=True)  # lane reduce -> (TB, 1)
    tot = jnp.sum(row, axis=0, keepdims=True)  # sublane reduce -> (1, 1)
    o_ref[...] += tot.reshape(1, 1, 1, 1)


def tag_pair_mse_loss(u_emb, i_emb, tuT_stack, tiT_stack, ul_stack, il_stack, T):
    """u_emb/i_emb: (B, D) f32.  tuT_stack/tiT_stack: (H, D, Tp) bf16 (prepped
    at init).  ul_stack/il_stack: (H, B, T) labels.  Returns (H,) losses."""
    B, D = u_emb.shape
    H, _, Tp = tuT_stack.shape
    Bp, TB = _tiling(B, _B_TILE, 8)
    _, TT = _tiling(Tp, _T_TILE, 128)
    u = _pad2d(u_emb.astype(jnp.bfloat16), Bp, D)
    i = _pad2d(i_emb.astype(jnp.bfloat16), Bp, D)
    # TODO(synk): at production B/T (tile multiples) these pads are no-ops;
    # callers should pass pre-stacked (H,B,T) labels to avoid an extra copy.
    ul = _pad3d(ul_stack.astype(jnp.float32), Bp, Tp)
    il = _pad3d(il_stack.astype(jnp.float32), Bp, Tp)
    NB, NT = Bp // TB, Tp // TT
    partials = pl.pallas_call(
        _tag_pair_loss_kernel,
        out_shape=jax.ShapeDtypeStruct((H, NB, 1, 1), jnp.float32),
        grid=(H, NB, NT),
        in_specs=[
            pl.BlockSpec((TB, D), lambda h, ib, it: (ib, 0)),
            pl.BlockSpec((TB, D), lambda h, ib, it: (ib, 0)),
            pl.BlockSpec((1, D, TT), lambda h, ib, it: (h, 0, it)),
            pl.BlockSpec((1, D, TT), lambda h, ib, it: (h, 0, it)),
            pl.BlockSpec((1, TB, TT), lambda h, ib, it: (h, ib, it)),
            pl.BlockSpec((1, TB, TT), lambda h, ib, it: (h, ib, it)),
        ],
        out_specs=pl.BlockSpec((1, 1, 1, 1), lambda h, ib, it: (h, ib, 0, 0)),
        compiler_params=pltpu.CompilerParams(
            dimension_semantics=("parallel", "parallel", "arbitrary"),
            vmem_limit_bytes=_VMEM_LIMIT),
    )(u, i, tuT_stack, tiT_stack, ul, il)
    # zero-padded rows/cols contribute exactly 0; normalize by the true count.
    return jnp.sum(partials.reshape(H, NB), axis=1) / float(B * T)


# ----------------------------------------------------------------------------
# Kernel 5: head-batched candidate scoring via full-table MXU matmul.
#   full[h,b,t] = (u[b]·tu[h,t]) * (i[b]·ti[h,t]); score = full[h,b,tag[b,c]]
# ----------------------------------------------------------------------------
def _pair_score_kernel(u_ref, i_ref, tuT_ref, tiT_ref, o_ref):
    ut = jnp.dot(u_ref[...], tuT_ref[0], preferred_element_type=jnp.float32)
    it = jnp.dot(i_ref[...], tiT_ref[0], preferred_element_type=jnp.float32)
    o_ref[...] = (ut * it)[None]


def candidate_scores(u_emb, i_emb, tuT_stack, tiT_stack, tag, T):
    """Returns (H, B, C) scores."""
    B, D = u_emb.shape
    H, _, Tp = tuT_stack.shape
    Bp, TB = _tiling(B, _B_TILE, 8)
    _, TT = _tiling(Tp, _T_TILE, 128)
    u = _pad2d(u_emb.astype(jnp.bfloat16), Bp, D)
    i = _pad2d(i_emb.astype(jnp.bfloat16), Bp, D)
    full = pl.pallas_call(
        _pair_score_kernel,
        out_shape=jax.ShapeDtypeStruct((H, Bp, Tp), jnp.float32),
        grid=(H, Bp // TB, Tp // TT),
        in_specs=[pl.BlockSpec((TB, D), lambda h, ib, it: (ib, 0)),
                  pl.BlockSpec((TB, D), lambda h, ib, it: (ib, 0)),
                  pl.BlockSpec((1, D, TT), lambda h, ib, it: (h, 0, it)),
                  pl.BlockSpec((1, D, TT), lambda h, ib, it: (h, 0, it))],
        out_specs=pl.BlockSpec((1, TB, TT), lambda h, ib, it: (h, ib, it)),
        compiler_params=pltpu.CompilerParams(
            dimension_semantics=("parallel", "parallel", "parallel"),
            vmem_limit_bytes=_VMEM_LIMIT),
    )(u, i, tuT_stack, tiT_stack)
    full = full[:, :B, :T]
    # TODO(synk): for large tag vocabularies fuse this (B,C) column gather into
    # kernel 5 via PrefetchScalarGridSpec (tag indices in SMEM) so only (H,B,C)
    # leaves the chip; low priority at T=128.
    idx = jnp.broadcast_to(tag[None], (full.shape[0],) + tag.shape)
    return jnp.take_along_axis(full, idx, axis=2)          # (H, B, C)


# ----------------------------------------------------------------------------
# AMF model container (params + forward-path methods mirroring the PyTorch API)
# ----------------------------------------------------------------------------
_REASON, _VIDEO, _INTEREST = 0, 1, 2


class AMF:
    def __init__(self, config, key):
        self.candidate_num = config["candidate_num"]
        D = config["embedding_size"]
        T = config["tag_num"]
        keys = jax.random.split(key, 8)
        # nn.Embedding weights ~ N(0, 0.01) per _init_weights
        mk = lambda k, n: (0.01 * jax.random.normal(k, (n, D))).astype(jnp.float32)
        self.user_embeddings = mk(keys[0], config["user_num"])
        self.item_embeddings = mk(keys[1], config["item_num"])
        self.reason_user_embeddings = mk(keys[2], T)
        self.reason_item_embeddings = mk(keys[3], T)
        self.video_user_embeddings = mk(keys[4], T)
        self.video_item_embeddings = mk(keys[5], T)
        self.interest_user_embeddings = mk(keys[6], T)
        self.interest_item_embeddings = mk(keys[7], T)

        # Pre-pad + cast to bf16 + transpose to (D, Tp) + stack heads ONCE.
        self._tag_num = T
        self._Tp, self._TT = _tiling(T, _T_TILE, 128)
        prep = lambda t: _pad2d(t, self._Tp, D).astype(jnp.bfloat16).T
        self._tagT_u = jnp.stack([prep(self.reason_user_embeddings),
                                  prep(self.video_user_embeddings),
                                  prep(self.interest_user_embeddings)])   # (3,D,Tp)
        self._tagT_i = jnp.stack([prep(self.reason_item_embeddings),
                                  prep(self.video_item_embeddings),
                                  prep(self.interest_item_embeddings)])   # (3,D,Tp)

    # -- embedding lookups (glue) --
    def _u(self, user):
        return jnp.take(self.user_embeddings, user, axis=0)

    def _i(self, item):
        return jnp.take(self.item_embeddings, item, axis=0)

    # -- rating --
    def predict_rating(self, user, item):
        return predict_rating_from_emb(self._u(user), self._i(item))

    def calculate_rating_loss(self, user, item, rating_label):
        return rating_mse_loss(self._u(user), self._i(item), rating_label)

    # -- generic tag-score matmul (spec-parity method) --
    def predict_tag_score(self, x_emb, tag_emb):
        return predict_tag_score(x_emb, tag_emb)

    # -- tag losses --
    def _head_loss(self, user, item, head, u_label, i_label):
        losses = tag_pair_mse_loss(self._u(user), self._i(item),
                                   self._tagT_u[head:head + 1],
                                   self._tagT_i[head:head + 1],
                                   u_label[None], i_label[None], self._tag_num)
        return losses[0]

    def calculate_reason_loss(self, user, item, u_label, i_label):
        return self._head_loss(user, item, _REASON, u_label, i_label)

    def calculate_video_loss(self, user, item, u_label, i_label):
        return self._head_loss(user, item, _VIDEO, u_label, i_label)

    def calculate_interest_loss(self, user, item, u_label, i_label):
        return self._head_loss(user, item, _INTEREST, u_label, i_label)

    def calculate_tag_losses(self, user, item, u_labels_stack, i_labels_stack):
        """Batched path: all three heads in ONE pallas_call.
        u_labels_stack / i_labels_stack: (3, B, T) stacked reason/video/interest
        labels.  Returns (3,) = (reason_loss, video_loss, interest_loss)."""
        return tag_pair_mse_loss(self._u(user), self._i(item),
                                 self._tagT_u, self._tagT_i,
                                 u_labels_stack, i_labels_stack, self._tag_num)

    # -- L2 regularizer (torch .norm(2) on a 2-D weight == Frobenius norm) --
    def calculate_l2_loss(self):
        tables = [self.user_embeddings, self.item_embeddings,
                  self.reason_user_embeddings, self.reason_item_embeddings,
                  self.video_user_embeddings, self.video_item_embeddings,
                  self.interest_user_embeddings, self.interest_item_embeddings]
        return sum(jnp.sqrt(jnp.sum(t ** 2)) for t in tables)

    # -- candidate scoring --
    def _head_score(self, user, item, tag, head):
        return candidate_scores(self._u(user), self._i(item),
                                self._tagT_u[head:head + 1],
                                self._tagT_i[head:head + 1],
                                tag, self._tag_num)[0]

    def predict_reason_score(self, user, item, tag):
        return self._head_score(user, item, tag, _REASON)

    def predict_video_score(self, user, item, tag):
        return self._head_score(user, item, tag, _VIDEO)

    def predict_interest_score(self, user, item, tag):
        return self._head_score(user, item, tag, _INTEREST)

    def predict_tag_scores(self, user, item, tag):
        """Batched path: all three heads in ONE pallas_call -> (3, B, C)."""
        return candidate_scores(self._u(user), self._i(item),
                                self._tagT_u, self._tagT_i, tag, self._tag_num)


# ----------------------------------------------------------------------------
if __name__ == "__main__":
    config = {
        "user_num": 32,
        "item_num": 48,
        "tag_num": 128,
        "embedding_size": 32,
        "candidate_num": 8,
    }
    key = jax.random.PRNGKey(0)
    k_model, k_u, k_i, k_t, k_r, k_lu, k_li = jax.random.split(key, 7)

    model = AMF(config, k_model)

    B = 4
    C = config["candidate_num"]
    T = config["tag_num"]

    user = jax.random.randint(k_u, (B,), 0, config["user_num"])
    item = jax.random.randint(k_i, (B,), 0, config["item_num"])
    tag = jax.random.randint(k_t, (B, C), 0, T)
    rating_label = jax.random.uniform(k_r, (B,), minval=1.0, maxval=5.0)
    u_tag_label = jax.random.uniform(k_lu, (B, T))
    i_tag_label = jax.random.uniform(k_li, (B, T))

    # --- run Pallas kernels ---
    rating = jax.block_until_ready(model.predict_rating(user, item))
    rating_loss = jax.block_until_ready(
        model.calculate_rating_loss(user, item, rating_label))
    reason_loss = jax.block_until_ready(
        model.calculate_reason_loss(user, item, u_tag_label, i_tag_label))
    video_loss = jax.block_until_ready(
        model.calculate_video_loss(user, item, u_tag_label, i_tag_label))
    interest_loss = jax.block_until_ready(
        model.calculate_interest_loss(user, item, u_tag_label, i_tag_label))
    u_labels_stack = jnp.stack([u_tag_label, u_tag_label, u_tag_label])
    i_labels_stack = jnp.stack([i_tag_label, i_tag_label, i_tag_label])
    all_tag_losses = jax.block_until_ready(
        model.calculate_tag_losses(user, item, u_labels_stack, i_labels_stack))
    l2 = jax.block_until_ready(model.calculate_l2_loss())
    reason_score = jax.block_until_ready(model.predict_reason_score(user, item, tag))
    video_score = jax.block_until_ready(model.predict_video_score(user, item, tag))
    interest_score = jax.block_until_ready(model.predict_interest_score(user, item, tag))
    all_scores = jax.block_until_ready(model.predict_tag_scores(user, item, tag))
    u_emb = jnp.take(model.user_embeddings, user, axis=0)
    i_emb = jnp.take(model.item_embeddings, item, axis=0)
    tag_score = jax.block_until_ready(
        model.predict_tag_score(u_emb, model.reason_user_embeddings))

    # --- reference checks ---
    # rating path is pure f32 (no MXU), compare tight against f32 reference.
    rating_ref = jnp.sum(u_emb * i_emb, axis=1)
    np.testing.assert_allclose(np.asarray(rating), np.asarray(rating_ref),
                               rtol=1e-4, atol=1e-8)
    rating_loss_ref = jnp.mean((rating_ref - rating_label) ** 2)
    np.testing.assert_allclose(float(rating_loss), float(rating_loss_ref),
                               rtol=1e-5, atol=1e-6)

    # matmul paths use bf16 MXU operands with f32 accumulation; compare against
    # a bf16-consistent reference.
    def bf16_mm(a, b):  # a (M,D), b (N,D) -> (M,N) with f32 accumulation
        return jnp.dot(a.astype(jnp.bfloat16), b.astype(jnp.bfloat16).T,
                       preferred_element_type=jnp.float32)

    ut_ref = bf16_mm(u_emb, model.reason_user_embeddings)
    it_ref = bf16_mm(i_emb, model.reason_item_embeddings)
    np.testing.assert_allclose(np.asarray(tag_score), np.asarray(ut_ref),
                               rtol=2e-3, atol=1e-6)
    reason_loss_ref = (jnp.mean((ut_ref - u_tag_label) ** 2)
                       + jnp.mean((it_ref - i_tag_label) ** 2))
    np.testing.assert_allclose(float(reason_loss), float(reason_loss_ref),
                               rtol=2e-3, atol=1e-6)

    # batched head path must match the per-head path.
    per_head = jnp.stack([reason_loss, video_loss, interest_loss])
    np.testing.assert_allclose(np.asarray(all_tag_losses), np.asarray(per_head),
                               rtol=1e-6, atol=1e-8)

    rs_ref = jnp.take_along_axis(ut_ref * it_ref, tag, axis=1)
    np.testing.assert_allclose(np.asarray(reason_score), np.asarray(rs_ref),
                               rtol=2e-3, atol=1e-7)
    np.testing.assert_allclose(np.asarray(all_scores[0]), np.asarray(reason_score),
                               rtol=1e-6, atol=1e-8)
    np.testing.assert_allclose(np.asarray(all_scores[1]), np.asarray(video_score),
                               rtol=1e-6, atol=1e-8)
    np.testing.assert_allclose(np.asarray(all_scores[2]), np.asarray(interest_score),
                               rtol=1e-6, atol=1e-8)

    assert rating.shape == (B,)
    assert tag_score.shape == (B, T)
    assert reason_score.shape == (B, C)
    assert video_score.shape == (B, C)
    assert interest_score.shape == (B, C)
    assert all_scores.shape == (3, B, C)
    assert all_tag_losses.shape == (3,)
    assert rating_loss.shape == () and video_loss.shape == ()
    assert interest_loss.shape == () and l2.shape == ()

    print("KERNEL_OK")
</pallas_src>

<mosaic_0001>
module attributes {stable_mosaic.version = 11 : i64} {
  func.func @_rating_kernel(%arg0: i32, %arg1: memref<8x32xf32, #tpu.memory_space<vmem>>, %arg2: memref<8x32xf32, #tpu.memory_space<vmem>>, %arg3: memref<8x1xf32, #tpu.memory_space<vmem>>) attributes {dimension_semantics = [#tpu.dimension_semantics<parallel>], iteration_bounds = array<i64: 1>, scalar_prefetch = 0 : i64, scratch_operands = 0 : i64, tpu.core_type = #tpu.core_type<tc>, window_params = [{transform_indices = @transform_0, window_bounds = array<i64: 8, 32>}, {transform_indices = @transform_1, window_bounds = array<i64: 8, 32>}, {transform_indices = @transform_2, window_bounds = array<i64: 8, 1>}]} {
    %c0 = arith.constant 0 : index
    %c0_0 = arith.constant 0 : index
    %0 = vector.load %arg1[%c0, %c0_0] : memref<8x32xf32, #tpu.memory_space<vmem>>, vector<8x32xf32>
    %c0_1 = arith.constant 0 : index
    %c0_2 = arith.constant 0 : index
    %1 = vector.load %arg2[%c0_1, %c0_2] : memref<8x32xf32, #tpu.memory_space<vmem>>, vector<8x32xf32>
    %2 = arith.mulf %0, %1 : vector<8x32xf32>
    %cst = arith.constant dense<0.000000e+00> : vector<8xf32>
    %3 = vector.multi_reduction <add>, %2, %cst [1] : vector<8x32xf32> to vector<8xf32>
    %4 = vector.shape_cast %3 : vector<8xf32> to vector<8x1xf32>
    %c0_3 = arith.constant 0 : index
    %c0_4 = arith.constant 0 : index
    %5 = vector.load %arg3[%c0_3, %c0_4] : memref<8x1xf32, #tpu.memory_space<vmem>>, vector<8x1xf32>
    tpu.vector_store %arg3[%c0_3, %c0_4], %4 {strides = array<i32>} : memref<8x1xf32, #tpu.memory_space<vmem>>, vector<8x1xf32>,
    return
  }
  func.func @transform_0(%arg0: i32) -> (i32, i32) {
    %c0_i32 = arith.constant 0 : i32
    %c0_i32_0 = arith.constant 0 : i32
    return %arg0, %c0_i32 : i32, i32
  }
  func.func @transform_1(%arg0: i32) -> (i32, i32) {
    %c0_i32 = arith.constant 0 : i32
    %c0_i32_0 = arith.constant 0 : i32
    return %arg0, %c0_i32 : i32, i32
  }
  func.func @transform_2(%arg0: i32) -> (i32, i32) {
    %c0_i32 = arith.constant 0 : i32
    %c0_i32_0 = arith.constant 0 : i32
    return %arg0, %c0_i32 : i32, i32
  }
}

</mosaic_0001>

<bundles_post_ra>
// kernel: tpu_custom_call.1
= control target key start
LH: loop header
LB: loop body
LE: loop exit
PB: predicated region body
PF: predicated region fallthrough
CT: control target
= control target key end

     0   :  { %7 = vsyncpa [#allocation3], 0  ;;  %s134_s0 = inlined_call_operand.hbm [shape: f32[8,32], index: 0, kind: input, shape index: {}]   ;;  %s135_s1 = inlined_call_operand.hbm [shape: f32[8,32], index: 1, kind: input, shape index: {}]   ;;  %s136_s2 = inlined_call_operand.vmem [shape: f32[8,1], index: 2, kind: output, shape index: {}]  }
   0x1   :  { %s14_s11 = sshll.u32 %s134_s0, 4  ;;  %s15_s11 = int_to_ptr.hbm [resolvable:$true] %s14_s11 }
   0x2   :  { %8 = vsyncpa [#allocation5], 0  ;;  %s108_s12 = smov [#allocation2]   ;;  %s25_s16 = sshll.u32 %s135_s1, 4  ;;  %s26_s16 = int_to_ptr.hbm [resolvable:$true] %s25_s16 }
   0x3   :  { %s16_s13 = sshll.u32 %s108_s12, 4  ;;  %s109_s17 = smov [#allocation4]   ;;  %s17_s13 = int_to_ptr.vmem [resolvable:$true] %s16_s13 }
   0x4   :  { %19 = dma.hbm_to_vmem [thread:$0]  %s15_s11, 128, %s17_s13, [#allocation3]  }
   0x5   :  { %s27_s18 = sshll.u32 %s109_s17, 4  ;;  %s28_s18 = int_to_ptr.vmem [resolvable:$true] %s27_s18 }
   0x6   :  { %30 = dma.hbm_to_vmem [thread:$0]  %s26_s16, 128, %s28_s18, [#allocation5]  }
   0x7   :  { %104 = dma.done.wait [#allocation3], 128  }
   0x8   :  { %105 = vsyncadd [#allocation3], 4294967168 }
   0x9   :  { %106 = dma.done.wait [#allocation5], 128  }
   0xa   :  { %107 = vsyncadd [#allocation5], 4294967168  ;;  %v39_v0 = vld [vmem:[#allocation2] sm:$0xff]  ;;  %v40_v1 = vld [vmem:[#allocation4] sm:$0xff]  ;;  %vm42_vm0 = vcmask 261120   ;;  %vm46_vm1 = vcmask 7168  }
   0xb   :  { %v41_v2 = vmul.f32 %v40_v1, %v39_v0 }
   0xd   :  { %v43_v3 = vsel %vm42_vm0, %v41_v2, 0.0 }
   0xe   :  { %44 = vadd.xlane.f32.xlu0 %v43_v3 }
  0x81   :  { %v45_v4 = vpop.xlane.xlu0 %44 }
  0x82   :  { %47 = vst.msk [vmem:[%s136_s2] sm:$0xff] %vm46_vm1, %v45_v4 }
  0x83   :  { %52 = vsyncpa [#allocation3], 1 }
  0x84   :  { %53 = vsyncpa [#allocation5], 1 }

</bundles_post_ra>
